<compile_context>
chip_gen: v6e
topology: v6e:2x2x1
jax: 0.10.0
libtpu: 0.0.40
codegen_flags: <defaults>
</compile_context>

<pallas_src>
import functools

import jax
import jax.numpy as jnp
import numpy as np
from jax import lax
from jax.experimental import pallas as pl
from jax.experimental.pallas import tpu as pltpu


def _qnet_select_kernel(c0_ref, joint_ref, wt_ref, out_ref, *, num_rows, a):
    """One batch tile: vectorized compare-and-select gather.

    c0_ref, joint_ref : (1, tb) int32 index tiles in VMEM (joint is already
                        offset by R0 into the fused table).
    wt_ref            : (2A, R) f32 fused value table; column r holds
                        [W_fused[r, :], W_fused[r, :]] stacked.
    out_ref           : (2A, tb) f32 lane-dense output slab:
                        rows [0, A) -> q0 transposed, rows [A, 2A) -> q1.T.
    """
    two_a, tb = out_ref.shape

    # Selection-index matrix, built once per tile (hoisted broadcasts):
    # top A rows select with cards_0, bottom A rows with the offset joint idx.
    rows = lax.broadcasted_iota(jnp.int32, (two_a, tb), 0)
    c0_b = jnp.broadcast_to(c0_ref[...], (two_a, tb))
    jt_b = jnp.broadcast_to(joint_ref[...], (two_a, tb))
    idx = jnp.where(rows < a, c0_b, jt_b)

    w_all = wt_ref[...]                        # (2A, R) — tiny, single load
    acc = jnp.zeros((two_a, tb), jnp.float32)
    for r in range(num_rows):                  # static unroll, R ~ 20 rows
        acc = jnp.where(idx == r, w_all[:, r:r + 1], acc)
    out_ref[...] = acc


def _round_up(x, m):
    return ((x + m - 1) // m) * m


def _batch_tiling(batch):
    """Pick (tile_rows, grid_steps, padded_batch) for the batch axis."""
    b = _round_up(batch, 128)
    if b <= 128:
        tb = 128
    elif b <= 4096:
        # >= 2 grid steps so the "parallel" axis feeds both v7x TensorCores.
        tb = _round_up(b // 2, 128)
    else:
        tb = 2048
    steps = -(-b // tb)
    return tb, steps, steps * tb


def qnet_forward(cards_0, cards_1, u0, weights_0, weights_1, *,
                 number_of_actions, bad_mode):
    """Pallas implementation of QNet.forward.

    cards_0, cards_1, u0 : int arrays of shape (B,)
    weights_0            : float32 (number_of_cards, A)
    weights_1            : float32 (number_of_cards * A^2, A)
    returns (q0, q1)     : float32 (B, A), (B, A)
    """
    greedy_factor = 1 if bad_mode > 3 else 0
    a = number_of_actions
    batch = int(cards_0.shape[0])
    r0, a0 = weights_0.shape
    r1, a1 = weights_1.shape
    assert a0 == a and a1 == a
    num_rows = r0 + r1

    # Fold the joint-index arithmetic here ((A + greedy_factor) is a
    # compile-time constant) and pre-offset by R0 into the fused table.
    c0 = cards_0.astype(jnp.int32)
    joint = (cards_1.astype(jnp.int32) * (a * a)
             + u0.astype(jnp.int32) * (a + greedy_factor)
             + r0)

    # Fused, transposed value table: column r carries W_fused[r, :] twice so
    # one select sweep fills both the q0 and q1 halves of the output slab.
    w_fused = jnp.concatenate([weights_0, weights_1], axis=0).astype(jnp.float32)
    wt = jnp.concatenate([w_fused.T, w_fused.T], axis=0)        # (2A, R)

    tb, grid_n, b_pad = _batch_tiling(batch)
    pad = b_pad - batch
    # Pad with an out-of-range index -> padded columns stay zero (sliced off).
    c0_p = jnp.pad(c0, (0, pad), constant_values=num_rows).reshape(1, b_pad)
    joint_p = jnp.pad(joint, (0, pad), constant_values=num_rows).reshape(1, b_pad)

    out = pl.pallas_call(
        functools.partial(_qnet_select_kernel, num_rows=num_rows, a=a),
        out_shape=jax.ShapeDtypeStruct((2 * a, b_pad), jnp.float32),
        grid_spec=pltpu.PrefetchScalarGridSpec(
            num_scalar_prefetch=0,
            grid=(grid_n,),
            in_specs=[
                pl.BlockSpec((1, tb), lambda t: (0, t)),            # cards_0 tile
                pl.BlockSpec((1, tb), lambda t: (0, t)),            # joint tile
                pl.BlockSpec((2 * a, num_rows), lambda t: (0, 0)),  # value table
            ],
            out_specs=pl.BlockSpec((2 * a, tb), lambda t: (0, t)),  # fused slab
        ),
        compiler_params=pltpu.CompilerParams(
            dimension_semantics=("parallel",)),
    )(c0_p, joint_p, wt)

    # Layout plumbing back to the PyTorch output shapes.
    q0 = out[:a, :batch].T
    q1 = out[a:, :batch].T
    return q0, q1


if __name__ == "__main__":
    number_of_cards = 2
    number_of_actions = 3
    bad_mode = 5          # > 3  =>  greedy_factor = 1
    batch = 8

    key = jax.random.PRNGKey(0)
    k0, k1, k2, k3, k4 = jax.random.split(key, 5)

    # PyTorch module zero-inits its parameters; use random values here so the
    # gather is exercised nontrivially.
    weights_0 = jax.random.normal(
        k0, (number_of_cards, number_of_actions), dtype=jnp.float32)
    weights_1 = jax.random.normal(
        k1, (number_of_cards * number_of_actions ** 2, number_of_actions),
        dtype=jnp.float32)

    cards_0 = jax.random.randint(k2, (batch,), 0, number_of_cards, dtype=jnp.int32)
    cards_1 = jax.random.randint(k3, (batch,), 0, number_of_cards, dtype=jnp.int32)
    u0 = jax.random.randint(k4, (batch,), 0, number_of_actions, dtype=jnp.int32)

    q0, q1 = qnet_forward(cards_0, cards_1, u0, weights_0, weights_1,
                          number_of_actions=number_of_actions,
                          bad_mode=bad_mode)
    q0 = jax.block_until_ready(q0)
    q1 = jax.block_until_ready(q1)

    # Pure-JAX reference (mirrors the PyTorch forward exactly).
    greedy_factor = 1 if bad_mode > 3 else 0
    q0_expect = weights_0[cards_0]
    joint = (cards_1 * number_of_actions ** 2 + u0 * number_of_actions
             + u0 * greedy_factor)
    q1_expect = weights_1[joint]

    assert np.allclose(np.asarray(q0), np.asarray(q0_expect), atol=1e-6)
    assert np.allclose(np.asarray(q1), np.asarray(q1_expect), atol=1e-6)
    print("KERNEL_OK")
</pallas_src>

<mosaic_0001>
module attributes {stable_mosaic.version = 11 : i64} {
  func.func @_qnet_select_kernel(%arg0: i32, %arg1: memref<1x128xi32, #tpu.memory_space<vmem>>, %arg2: memref<1x128xi32, #tpu.memory_space<vmem>>, %arg3: memref<6x20xf32, #tpu.memory_space<vmem>>, %arg4: memref<6x128xf32, #tpu.memory_space<vmem>>) attributes {dimension_semantics = [#tpu.dimension_semantics<parallel>], iteration_bounds = array<i64: 1>, scalar_prefetch = 0 : i64, scratch_operands = 0 : i64, tpu.core_type = #tpu.core_type<tc>, window_params = [{transform_indices = @transform_0, window_bounds = array<i64: 1, 128>}, {transform_indices = @transform_1, window_bounds = array<i64: 1, 128>}, {pipeline_mode = #tpu.pipeline_mode<synchronous>, transform_indices = @transform_2, window_bounds = array<i64: 6, 20>}, {transform_indices = @transform_3, window_bounds = array<i64: 6, 128>}]} {
    %0 = tpu.iota {dimensions = array<i32: 0>} : vector<6x128xi32>
    %c0 = arith.constant 0 : index
    %c0_0 = arith.constant 0 : index
    %1 = vector.load %arg1[%c0, %c0_0] : memref<1x128xi32, #tpu.memory_space<vmem>>, vector<1x128xi32>
    %2 = vector.shape_cast %1 : vector<1x128xi32> to vector<1x128xi32>
    %3 = vector.broadcast %2 : vector<1x128xi32> to vector<6x128xi32>
    %c0_1 = arith.constant 0 : index
    %c0_2 = arith.constant 0 : index
    %4 = vector.load %arg2[%c0_1, %c0_2] : memref<1x128xi32, #tpu.memory_space<vmem>>, vector<1x128xi32>
    %5 = vector.shape_cast %4 : vector<1x128xi32> to vector<1x128xi32>
    %6 = vector.broadcast %5 : vector<1x128xi32> to vector<6x128xi32>
    %c3_i32 = arith.constant 3 : i32
    %7 = vector.broadcast %c3_i32 : i32 to vector<6x128xi32>
    %8 = arith.cmpi slt, %0, %7 : vector<6x128xi32>
    %9 = arith.select %8, %3, %6 : vector<6x128xi1>, vector<6x128xi32>
    %c0_3 = arith.constant 0 : index
    %c0_4 = arith.constant 0 : index
    %10 = vector.load %arg3[%c0_3, %c0_4] : memref<6x20xf32, #tpu.memory_space<vmem>>, vector<6x20xf32>
    %cst = arith.constant 0.000000e+00 : f32
    %11 = vector.broadcast %cst : f32 to vector<6x128xf32>
    %c0_i32 = arith.constant 0 : i32
    %12 = vector.broadcast %c0_i32 : i32 to vector<6x128xi32>
    %13 = arith.cmpi eq, %9, %12 : vector<6x128xi32>
    %14 = vector.extract_strided_slice %10 {offsets = [0, 0], sizes = [6, 1], strides = [1, 1]} : vector<6x20xf32> to vector<6x1xf32>
    %15 = vector.shape_cast %14 : vector<6x1xf32> to vector<6x1xf32>
    %16 = vector.broadcast %15 : vector<6x1xf32> to vector<6x128xf32>
    %17 = arith.select %13, %16, %11 : vector<6x128xi1>, vector<6x128xf32>
    %c1_i32 = arith.constant 1 : i32
    %18 = vector.broadcast %c1_i32 : i32 to vector<6x128xi32>
    %19 = arith.cmpi eq, %9, %18 : vector<6x128xi32>
    %20 = vector.extract_strided_slice %10 {offsets = [0, 1], sizes = [6, 1], strides = [1, 1]} : vector<6x20xf32> to vector<6x1xf32>
    %21 = vector.shape_cast %20 : vector<6x1xf32> to vector<6x1xf32>
    %22 = vector.broadcast %21 : vector<6x1xf32> to vector<6x128xf32>
    %23 = arith.select %19, %22, %17 : vector<6x128xi1>, vector<6x128xf32>
    %c2_i32 = arith.constant 2 : i32
    %24 = vector.broadcast %c2_i32 : i32 to vector<6x128xi32>
    %25 = arith.cmpi eq, %9, %24 : vector<6x128xi32>
    %26 = vector.extract_strided_slice %10 {offsets = [0, 2], sizes = [6, 1], strides = [1, 1]} : vector<6x20xf32> to vector<6x1xf32>
    %27 = vector.shape_cast %26 : vector<6x1xf32> to vector<6x1xf32>
    %28 = vector.broadcast %27 : vector<6x1xf32> to vector<6x128xf32>
    %29 = arith.select %25, %28, %23 : vector<6x128xi1>, vector<6x128xf32>
    %c3_i32_5 = arith.constant 3 : i32
    %30 = vector.broadcast %c3_i32_5 : i32 to vector<6x128xi32>
    %31 = arith.cmpi eq, %9, %30 : vector<6x128xi32>
    %32 = vector.extract_strided_slice %10 {offsets = [0, 3], sizes = [6, 1], strides = [1, 1]} : vector<6x20xf32> to vector<6x1xf32>
    %33 = vector.shape_cast %32 : vector<6x1xf32> to vector<6x1xf32>
    %34 = vector.broadcast %33 : vector<6x1xf32> to vector<6x128xf32>
    %35 = arith.select %31, %34, %29 : vector<6x128xi1>, vector<6x128xf32>
    %c4_i32 = arith.constant 4 : i32
    %36 = vector.broadcast %c4_i32 : i32 to vector<6x128xi32>
    %37 = arith.cmpi eq, %9, %36 : vector<6x128xi32>
    %38 = vector.extract_strided_slice %10 {offsets = [0, 4], sizes = [6, 1], strides = [1, 1]} : vector<6x20xf32> to vector<6x1xf32>
    %39 = vector.shape_cast %38 : vector<6x1xf32> to vector<6x1xf32>
    %40 = vector.broadcast %39 : vector<6x1xf32> to vector<6x128xf32>
    %41 = arith.select %37, %40, %35 : vector<6x128xi1>, vector<6x128xf32>
    %c5_i32 = arith.constant 5 : i32
    %42 = vector.broadcast %c5_i32 : i32 to vector<6x128xi32>
    %43 = arith.cmpi eq, %9, %42 : vector<6x128xi32>
    %44 = vector.extract_strided_slice %10 {offsets = [0, 5], sizes = [6, 1], strides = [1, 1]} : vector<6x20xf32> to vector<6x1xf32>
    %45 = vector.shape_cast %44 : vector<6x1xf32> to vector<6x1xf32>
    %46 = vector.broadcast %45 : vector<6x1xf32> to vector<6x128xf32>
    %47 = arith.select %43, %46, %41 : vector<6x128xi1>, vector<6x128xf32>
    %c6_i32 = arith.constant 6 : i32
    %48 = vector.broadcast %c6_i32 : i32 to vector<6x128xi32>
    %49 = arith.cmpi eq, %9, %48 : vector<6x128xi32>
    %50 = vector.extract_strided_slice %10 {offsets = [0, 6], sizes = [6, 1], strides = [1, 1]} : vector<6x20xf32> to vector<6x1xf32>
    %51 = vector.shape_cast %50 : vector<6x1xf32> to vector<6x1xf32>
    %52 = vector.broadcast %51 : vector<6x1xf32> to vector<6x128xf32>
    %53 = arith.select %49, %52, %47 : vector<6x128xi1>, vector<6x128xf32>
    %c7_i32 = arith.constant 7 : i32
    %54 = vector.broadcast %c7_i32 : i32 to vector<6x128xi32>
    %55 = arith.cmpi eq, %9, %54 : vector<6x128xi32>
    %56 = vector.extract_strided_slice %10 {offsets = [0, 7], sizes = [6, 1], strides = [1, 1]} : vector<6x20xf32> to vector<6x1xf32>
    %57 = vector.shape_cast %56 : vector<6x1xf32> to vector<6x1xf32>
    %58 = vector.broadcast %57 : vector<6x1xf32> to vector<6x128xf32>
    %59 = arith.select %55, %58, %53 : vector<6x128xi1>, vector<6x128xf32>
    %c8_i32 = arith.constant 8 : i32
    %60 = vector.broadcast %c8_i32 : i32 to vector<6x128xi32>
    %61 = arith.cmpi eq, %9, %60 : vector<6x128xi32>
    %62 = vector.extract_strided_slice %10 {offsets = [0, 8], sizes = [6, 1], strides = [1, 1]} : vector<6x20xf32> to vector<6x1xf32>
    %63 = vector.shape_cast %62 : vector<6x1xf32> to vector<6x1xf32>
    %64 = vector.broadcast %63 : vector<6x1xf32> to vector<6x128xf32>
    %65 = arith.select %61, %64, %59 : vector<6x128xi1>, vector<6x128xf32>
    %c9_i32 = arith.constant 9 : i32
    %66 = vector.broadcast %c9_i32 : i32 to vector<6x128xi32>
    %67 = arith.cmpi eq, %9, %66 : vector<6x128xi32>
    %68 = vector.extract_strided_slice %10 {offsets = [0, 9], sizes = [6, 1], strides = [1, 1]} : vector<6x20xf32> to vector<6x1xf32>
    %69 = vector.shape_cast %68 : vector<6x1xf32> to vector<6x1xf32>
    %70 = vector.broadcast %69 : vector<6x1xf32> to vector<6x128xf32>
    %71 = arith.select %67, %70, %65 : vector<6x128xi1>, vector<6x128xf32>
    %c10_i32 = arith.constant 10 : i32
    %72 = vector.broadcast %c10_i32 : i32 to vector<6x128xi32>
    %73 = arith.cmpi eq, %9, %72 : vector<6x128xi32>
    %74 = vector.extract_strided_slice %10 {offsets = [0, 10], sizes = [6, 1], strides = [1, 1]} : vector<6x20xf32> to vector<6x1xf32>
    %75 = vector.shape_cast %74 : vector<6x1xf32> to vector<6x1xf32>
    %76 = vector.broadcast %75 : vector<6x1xf32> to vector<6x128xf32>
    %77 = arith.select %73, %76, %71 : vector<6x128xi1>, vector<6x128xf32>
    %c11_i32 = arith.constant 11 : i32
    %78 = vector.broadcast %c11_i32 : i32 to vector<6x128xi32>
    %79 = arith.cmpi eq, %9, %78 : vector<6x128xi32>
    %80 = vector.extract_strided_slice %10 {offsets = [0, 11], sizes = [6, 1], strides = [1, 1]} : vector<6x20xf32> to vector<6x1xf32>
    %81 = vector.shape_cast %80 : vector<6x1xf32> to vector<6x1xf32>
    %82 = vector.broadcast %81 : vector<6x1xf32> to vector<6x128xf32>
    %83 = arith.select %79, %82, %77 : vector<6x128xi1>, vector<6x128xf32>
    %c12_i32 = arith.constant 12 : i32
    %84 = vector.broadcast %c12_i32 : i32 to vector<6x128xi32>
    %85 = arith.cmpi eq, %9, %84 : vector<6x128xi32>
    %86 = vector.extract_strided_slice %10 {offsets = [0, 12], sizes = [6, 1], strides = [1, 1]} : vector<6x20xf32> to vector<6x1xf32>
    %87 = vector.shape_cast %86 : vector<6x1xf32> to vector<6x1xf32>
    %88 = vector.broadcast %87 : vector<6x1xf32> to vector<6x128xf32>
    %89 = arith.select %85, %88, %83 : vector<6x128xi1>, vector<6x128xf32>
    %c13_i32 = arith.constant 13 : i32
    %90 = vector.broadcast %c13_i32 : i32 to vector<6x128xi32>
    %91 = arith.cmpi eq, %9, %90 : vector<6x128xi32>
    %92 = vector.extract_strided_slice %10 {offsets = [0, 13], sizes = [6, 1], strides = [1, 1]} : vector<6x20xf32> to vector<6x1xf32>
    %93 = vector.shape_cast %92 : vector<6x1xf32> to vector<6x1xf32>
    %94 = vector.broadcast %93 : vector<6x1xf32> to vector<6x128xf32>
    %95 = arith.select %91, %94, %89 : vector<6x128xi1>, vector<6x128xf32>
    %c14_i32 = arith.constant 14 : i32
    %96 = vector.broadcast %c14_i32 : i32 to vector<6x128xi32>
    %97 = arith.cmpi eq, %9, %96 : vector<6x128xi32>
    %98 = vector.extract_strided_slice %10 {offsets = [0, 14], sizes = [6, 1], strides = [1, 1]} : vector<6x20xf32> to vector<6x1xf32>
    %99 = vector.shape_cast %98 : vector<6x1xf32> to vector<6x1xf32>
    %100 = vector.broadcast %99 : vector<6x1xf32> to vector<6x128xf32>
    %101 = arith.select %97, %100, %95 : vector<6x128xi1>, vector<6x128xf32>
    %c15_i32 = arith.constant 15 : i32
    %102 = vector.broadcast %c15_i32 : i32 to vector<6x128xi32>
    %103 = arith.cmpi eq, %9, %102 : vector<6x128xi32>
    %104 = vector.extract_strided_slice %10 {offsets = [0, 15], sizes = [6, 1], strides = [1, 1]} : vector<6x20xf32> to vector<6x1xf32>
    %105 = vector.shape_cast %104 : vector<6x1xf32> to vector<6x1xf32>
    %106 = vector.broadcast %105 : vector<6x1xf32> to vector<6x128xf32>
    %107 = arith.select %103, %106, %101 : vector<6x128xi1>, vector<6x128xf32>
    %c16_i32 = arith.constant 16 : i32
    %108 = vector.broadcast %c16_i32 : i32 to vector<6x128xi32>
    %109 = arith.cmpi eq, %9, %108 : vector<6x128xi32>
    %110 = vector.extract_strided_slice %10 {offsets = [0, 16], sizes = [6, 1], strides = [1, 1]} : vector<6x20xf32> to vector<6x1xf32>
    %111 = vector.shape_cast %110 : vector<6x1xf32> to vector<6x1xf32>
    %112 = vector.broadcast %111 : vector<6x1xf32> to vector<6x128xf32>
    %113 = arith.select %109, %112, %107 : vector<6x128xi1>, vector<6x128xf32>
    %c17_i32 = arith.constant 17 : i32
    %114 = vector.broadcast %c17_i32 : i32 to vector<6x128xi32>
    %115 = arith.cmpi eq, %9, %114 : vector<6x128xi32>
    %116 = vector.extract_strided_slice %10 {offsets = [0, 17], sizes = [6, 1], strides = [1, 1]} : vector<6x20xf32> to vector<6x1xf32>
    %117 = vector.shape_cast %116 : vector<6x1xf32> to vector<6x1xf32>
    %118 = vector.broadcast %117 : vector<6x1xf32> to vector<6x128xf32>
    %119 = arith.select %115, %118, %113 : vector<6x128xi1>, vector<6x128xf32>
    %c18_i32 = arith.constant 18 : i32
    %120 = vector.broadcast %c18_i32 : i32 to vector<6x128xi32>
    %121 = arith.cmpi eq, %9, %120 : vector<6x128xi32>
    %122 = vector.extract_strided_slice %10 {offsets = [0, 18], sizes = [6, 1], strides = [1, 1]} : vector<6x20xf32> to vector<6x1xf32>
    %123 = vector.shape_cast %122 : vector<6x1xf32> to vector<6x1xf32>
    %124 = vector.broadcast %123 : vector<6x1xf32> to vector<6x128xf32>
    %125 = arith.select %121, %124, %119 : vector<6x128xi1>, vector<6x128xf32>
    %c19_i32 = arith.constant 19 : i32
    %126 = vector.broadcast %c19_i32 : i32 to vector<6x128xi32>
    %127 = arith.cmpi eq, %9, %126 : vector<6x128xi32>
    %128 = vector.extract_strided_slice %10 {offsets = [0, 19], sizes = [6, 1], strides = [1, 1]} : vector<6x20xf32> to vector<6x1xf32>
    %129 = vector.shape_cast %128 : vector<6x1xf32> to vector<6x1xf32>
    %130 = vector.broadcast %129 : vector<6x1xf32> to vector<6x128xf32>
    %131 = arith.select %127, %130, %125 : vector<6x128xi1>, vector<6x128xf32>
    %c0_6 = arith.constant 0 : index
    %c0_7 = arith.constant 0 : index
    %132 = vector.load %arg4[%c0_6, %c0_7] : memref<6x128xf32, #tpu.memory_space<vmem>>, vector<6x128xf32>
    tpu.vector_store %arg4[%c0_6, %c0_7], %131 {strides = array<i32>} : memref<6x128xf32, #tpu.memory_space<vmem>>, vector<6x128xf32>,
    return
  }
  func.func @transform_0(%arg0: i32) -> (i32, i32) {
    %c0_i32 = arith.constant 0 : i32
    %c0_i32_0 = arith.constant 0 : i32
    return %c0_i32, %arg0 : i32, i32
  }
  func.func @transform_1(%arg0: i32) -> (i32, i32) {
    %c0_i32 = arith.constant 0 : i32
    %c0_i32_0 = arith.constant 0 : i32
    return %c0_i32, %arg0 : i32, i32
  }
  func.func @transform_2(%arg0: i32) -> (i32, i32) {
    %c0_i32 = arith.constant 0 : i32
    %c0_i32_0 = arith.constant 0 : i32
    %c0_i32_1 = arith.constant 0 : i32
    return %c0_i32, %c0_i32_0 : i32, i32
  }
  func.func @transform_3(%arg0: i32) -> (i32, i32) {
    %c0_i32 = arith.constant 0 : i32
    %c0_i32_0 = arith.constant 0 : i32
    return %c0_i32, %arg0 : i32, i32
  }
}

</mosaic_0001>

<bundles_post_ra>
// kernel: tpu_custom_call.1
= control target key start
LH: loop header
LB: loop body
LE: loop exit
PB: predicated region body
PF: predicated region fallthrough
CT: control target
= control target key end

     0   :  { %8 = vsyncpa [#allocation3], 0  ;;  %s359_s0 = inlined_call_operand.hbm [shape: s32[1,128], index: 0, kind: input, shape index: {}]   ;;  %s360_s1 = inlined_call_operand.vmem [shape: s32[1,128], index: 1, kind: input, shape index: {}]   ;;  %s361_s2 = inlined_call_operand.hbm [shape: f32[6,20], index: 2, kind: input, shape index: {}]   ;;  %s362_s3 = inlined_call_operand.hbm [shape: f32[6,128], index: 3, kind: output, shape index: {}]  }
   0x1   :  { %9 = vsyncpa [#allocation6], 0 }
   0x2   :  { %10 = vsyncpa [#allocation4], 0  ;;  %s304_s12 = smov [#allocation2]   ;;  %s305_s14 = smov [#allocation5]  }
   0x3   :  { %s17_s13 = sshll.u32 %s304_s12, 4  ;;  %s29_s15 = sshll.u32 %s305_s14, 4  ;;  %s18_s13 = int_to_ptr.vmem [resolvable:$true] %s17_s13  ;;  %s30_s15 = int_to_ptr.vmem [resolvable:$true] %s29_s15 }
   0x4   :  { %s246_s16 = scalar_lea.vmem %s18_s13, 16  ;;  %s250_s17 = scalar_lea.vmem %s18_s13, 32 }
   0x5   :  { %p247_p0 = scmp.ne.s32.totalorder %s18_s13, %s246_s16  ;;  %p251_p1 = scmp.lt.s32.totalorder %s18_s13, %s18_s13 }
   0x6   :  { %p252_p2 = scmp.lt.s32.totalorder %s250_s17, %s246_s16 }
   0x8   :  { %p253_p3 = por %p252_p2, %p251_p1 }
   0xa   :  { %p254_p4 = pnand %p253_p3, %p247_p0 }
   0xc   :  { %257 = shalt.err (!%p254_p4)
}
   0xd   :  { %20 = dma.hbm_to_vmem [thread:$0]  %s359_s0, 16, %s18_s13, [#allocation3]  }
   0xe   :  { %s266_s20 = scalar_lea.vmem %s30_s15, 128  ;;  %p271_p6 = scmp.lt.s32.totalorder %s30_s15, %s30_s15 }
   0xf   :  { %p267_p5 = scmp.ne.s32.totalorder %s30_s15, %s266_s20  ;;  %p272_p7 = scmp.lt.s32.totalorder %s266_s20, %s266_s20 }
  0x11   :  { %p273_p8 = por %p272_p7, %p271_p6 }
  0x13   :  { %p274_p9 = pnand %p273_p8, %p267_p5 }
  0x15   :  { %277 = shalt.err (!%p274_p9)
}
  0x16   :  { %32 = dma.hbm_to_vmem [thread:$0]  %s361_s2, 128, %s30_s15, [#allocation6]  }
  0x17   :  { %298 = dma.done.wait [#allocation3], 16  }
  0x18   :  { %299 = vsyncadd [#allocation3], 4294967280 }
  0x19   :  { %300 = dma.done.wait [#allocation6], 128  }
  0x1a   :  { %301 = vsyncadd [#allocation6], 4294967168  ;;  %v306_v0 = vmov 2   ;;  %v307_v1 = vmov 0   ;;  %v53_v2 = vld [vmem:[#allocation5] sm:$0x3f]  ;;  %v39_v23 = vlaneseq }
  0x1b   :  { %219 = vset.pattern.permute.xlu1 %v306_v0  ;;  %217 = vset.pattern.permute.xlu0 %v307_v1  ;;  %v308_v3 = vmov 3   ;;  %v309_v4 = vmov 1   ;;  %v310_v5 = vmov 4   ;;  %v311_v6 = vmov 5   ;;  %v192_v27 = vld [vmem:[#allocation2] ss:$0 sm:$0xff] }
  0x1c   :  { %69 = vperm.xlu1 %219, %v53_v2   ;;  %57 = vperm.xlu0 %217, %v53_v2   ;;  %v312_v7 = vmov 6   ;;  %v313_v8 = vmov 8   ;;  %v314_v9 = vmov 7   ;;  %v315_v10 = vmov 11   ;;  %v193_v28 = vld [vmem:[%s360_s1] ss:$0 sm:$0xff] }
  0x1d   :  { %v316_v11 = vmov 9   ;;  %v317_v12 = vmov 14   ;;  %v318_v13 = vmov 10   ;;  %v319_v14 = vmov 17   ;;  %s326_s1 = smov [#allocation7]  }
  0x1e   :  { %v320_v15 = vmov 12   ;;  %v321_v16 = vmov 19   ;;  %v322_v17 = vmov 13   ;;  %v323_v18 = vmov 15   ;;  %s182_s23 = sshll.u32 %s326_s1, 4  ;;  %s183_s23 = int_to_ptr.vmem [resolvable:$true] %s182_s23 }
  0x1f   :  { %v324_v19 = vmov 16   ;;  %v325_v20 = vmov 18   ;;  %v40_v25 = vshrl.u32 %v39_v23, 7  ;;  %s278_s24 = scalar_lea.vmem %s183_s23, 128  ;;  %p283_p11 = scmp.lt.s32.totalorder %s183_s23, %s183_s23 }
  0x20   :  { %220 = vset.pattern.permute.xlu1 %v308_v3  ;;  %218 = vset.pattern.permute.xlu0 %v309_v4  ;;  %p279_p10 = scmp.ne.s32.totalorder %s183_s23, %s278_s24  ;;  %p284_p12 = scmp.lt.s32.totalorder %s278_s24, %s278_s24 }
  0x21   :  { %75 = vperm.xlu1 %220, %v53_v2   ;;  %63 = vperm.xlu0 %218, %v53_v2   ;;  %vm51_vm0 = vcmp.lt.s32.totalorder %v40_v25, 3 }
  0x22   :  { %v52_v29 = vsel %vm51_vm0, %v192_v27, %v193_v28  ;;  %p285_p13 = por %p284_p12, %p283_p11 }
  0x23   :  { %vm54_vm1 = vcmp.eq.s32.totalorder %v52_v29, 0  ;;  %vm61_vm2 = vcmp.eq.s32.totalorder %v52_v29, 1  ;;  %vm67_vm3 = vcmp.eq.s32.totalorder %v52_v29, 2  ;;  %vm73_vm4 = vcmp.eq.s32.totalorder %v52_v29, 3 }
  0x24   :  { %vm79_vm5 = vcmp.eq.s32.totalorder %v52_v29, 4  ;;  %vm85_vm6 = vcmp.eq.s32.totalorder %v52_v29, 5  ;;  %vm91_vm7 = vcmp.eq.s32.totalorder %v52_v29, 6  ;;  %vm97_vm8 = vcmp.eq.s32.totalorder %v52_v29, 7  ;;  %p286_p0 = pnand %p285_p13, %p279_p10 }
  0x25   :  { %221 = vset.pattern.permute.xlu1 %v310_v5  ;;  %222 = vset.pattern.permute.xlu0 %v311_v6  ;;  %vm103_vm9 = vcmp.eq.s32.totalorder %v52_v29, 8  ;;  %vm109_vm10 = vcmp.eq.s32.totalorder %v52_v29, 9  ;;  %vm115_vm11 = vcmp.eq.s32.totalorder %v52_v29, 10  ;;  %vm121_vm12 = vcmp.eq.s32.totalorder %v52_v29, 11 }
  0x26   :  { %81 = vperm.xlu1 %221, %v53_v2   ;;  %87 = vperm.xlu0 %222, %v53_v2   ;;  %vm127_vm13 = vcmp.eq.s32.totalorder %v52_v29, 12  ;;  %vm133_vm14 = vcmp.eq.s32.totalorder %v52_v29, 13  ;;  %vm139_vm15 = vcmp.eq.s32.totalorder %v52_v29, 14  ;;  %vm145_vm0 = vcmp.eq.s32.totalorder %v52_v29, 15 }
  0x2a   :  { %223 = vset.pattern.permute.xlu1 %v312_v7  ;;  %225 = vset.pattern.permute.xlu0 %v313_v8 }
  0x2b   :  { %93 = vperm.xlu1 %223, %v53_v2   ;;  %105 = vperm.xlu0 %225, %v53_v2  }
  0x2f   :  { %224 = vset.pattern.permute.xlu1 %v314_v9  ;;  %228 = vset.pattern.permute.xlu0 %v315_v10 }
  0x30   :  { %99 = vperm.xlu1 %224, %v53_v2   ;;  %123 = vperm.xlu0 %228, %v53_v2  }
  0x34   :  { %226 = vset.pattern.permute.xlu1 %v316_v11  ;;  %231 = vset.pattern.permute.xlu0 %v317_v12 }
  0x35   :  { %111 = vperm.xlu1 %226, %v53_v2   ;;  %141 = vperm.xlu0 %231, %v53_v2  }
  0x39   :  { %227 = vset.pattern.permute.xlu1 %v318_v13  ;;  %234 = vset.pattern.permute.xlu0 %v319_v14 }
  0x3a   :  { %117 = vperm.xlu1 %227, %v53_v2   ;;  %159 = vperm.xlu0 %234, %v53_v2  }
  0x3e   :  { %229 = vset.pattern.permute.xlu1 %v320_v15  ;;  %237 = vset.pattern.permute.xlu0 %v321_v16 }
  0x3f   :  { %129 = vperm.xlu1 %229, %v53_v2  }
  0x43   :  { %230 = vset.pattern.permute.xlu1 %v322_v17 }
  0x44   :  { %135 = vperm.xlu1 %230, %v53_v2  }
  0x48   :  { %232 = vset.pattern.permute.xlu1 %v323_v18 }
  0x49   :  { %147 = vperm.xlu1 %232, %v53_v2  }
  0x4d   :  { %233 = vset.pattern.permute.xlu1 %v324_v19 }
  0x4e   :  { %153 = vperm.xlu1 %233, %v53_v2  }
  0x52   :  { %235 = vset.pattern.permute.xlu1 %v325_v20 }
  0x53   :  { %165 = vperm.xlu1 %235, %v53_v2  }
  0x57   :  { %236 = vset.pattern.permute.xlu1 %v321_v16 }
  0x58   :  { %171 = vperm.xlu1 %236, %v53_v2  }
  0x97   :  { %v70_v21 = vpop.permute.xlu1 %69  ;;  %v58_v30 = vpop.permute.xlu0 %57 }
  0x98   :  { %v60_v33 = vsel %vm54_vm1, %v58_v30, 0.0  ;;  %vm151_vm1 = vcmp.eq.s32.totalorder %v52_v29, 16 }
  0x9c   :  { %v76_v22 = vpop.permute.xlu1 %75  ;;  %v64_v34 = vpop.permute.xlu0 %63 }
  0x9d   :  { %v66_v35 = vsel %vm61_vm2, %v64_v34, %v60_v33  ;;  %vm157_vm2 = vcmp.eq.s32.totalorder %v52_v29, 17 }
  0x9e   :  { %v72_v37 = vsel %vm67_vm3, %v70_v21, %v66_v35  ;;  %vm163_vm3 = vcmp.eq.s32.totalorder %v52_v29, 18 }
  0x9f   :  { %v78_v38 = vsel %vm73_vm4, %v76_v22, %v72_v37  ;;  %vm169_vm4 = vcmp.eq.s32.totalorder %v52_v29, 19 }
  0xa1   :  { %v82_v24 = vpop.permute.xlu1 %81  ;;  %v88_v41 = vpop.permute.xlu0 %87 }
  0xa2   :  { %v84_v40 = vsel %vm79_vm5, %v82_v24, %v78_v38 }
  0xa3   :  { %v90_v42 = vsel %vm85_vm6, %v88_v41, %v84_v40 }
  0xa6   :  { %v94_v26 = vpop.permute.xlu1 %93  ;;  %v106_v46 = vpop.permute.xlu0 %105 }
  0xa7   :  { %v96_v43 = vsel %vm91_vm7, %v94_v26, %v90_v42 }
  0xab   :  { %v100_v31 = vpop.permute.xlu1 %99  ;;  %v124_v51 = vpop.permute.xlu0 %123 }
  0xac   :  { %v102_v45 = vsel %vm97_vm8, %v100_v31, %v96_v43 }
  0xad   :  { %v108_v47 = vsel %vm103_vm9, %v106_v46, %v102_v45 }
  0xb0   :  { %v112_v32 = vpop.permute.xlu1 %111  ;;  %v142_v56 = vpop.permute.xlu0 %141 }
  0xb1   :  { %v114_v48 = vsel %vm109_vm10, %v112_v32, %v108_v47 }
  0xb5   :  { %v118_v36 = vpop.permute.xlu1 %117  ;;  %v160_v61 = vpop.permute.xlu0 %159 }
  0xb6   :  { %v120_v50 = vsel %vm115_vm11, %v118_v36, %v114_v48 }
  0xb7   :  { %v126_v52 = vsel %vm121_vm12, %v124_v51, %v120_v50 }
  0xba   :  { %v130_v39 = vpop.permute.xlu1 %129 }
  0xbb   :  { %v132_v53 = vsel %vm127_vm13, %v130_v39, %v126_v52 }
  0xbf   :  { %v136_v44 = vpop.permute.xlu1 %135 }
  0xc0   :  { %v138_v55 = vsel %vm133_vm14, %v136_v44, %v132_v53 }
  0xc1   :  { %v144_v57 = vsel %vm139_vm15, %v142_v56, %v138_v55 }
  0xc4   :  { %v148_v49 = vpop.permute.xlu1 %147 }
  0xc5   :  { %v150_v58 = vsel %vm145_vm0, %v148_v49, %v144_v57 }
  0xc9   :  { %v154_v54 = vpop.permute.xlu1 %153 }
  0xca   :  { %v156_v60 = vsel %vm151_vm1, %v154_v54, %v150_v58 }
  0xcb   :  { %v162_v62 = vsel %vm157_vm2, %v160_v61, %v156_v60 }
  0xce   :  { %v166_v59 = vpop.permute.xlu1 %165 }
  0xcf   :  { %v168_v63 = vsel %vm163_vm3, %v166_v59, %v162_v62 }
  0xd3   :  { %v172_v0 = vpop.permute.xlu1 %171 }
  0xd4   :  { %v174_v1 = vsel %vm169_vm4, %v172_v0, %v168_v63 }
  0xd5   :  { %175 = vst [vmem:[#allocation7] sm:$0x3f] %v174_v1 }
  0xd6   :  { %289 = shalt.err (!%p286_p0)
}
  0xd7   :  { %185 = dma.vmem_to_hbm [thread:$0]  %s183_s23, 128, %s362_s3, [#allocation4]  }
  0xd8   :  { %302 = dma.done.wait [#allocation4], 128  }
  0xd9   :  { %303 = vsyncadd [#allocation4], 4294967168 }
  0xda   :  { %189 = vsyncpa [#allocation3], 1 }
  0xdb   :  { %190 = vsyncpa [#allocation6], 1 }
  0xdc   :  { %191 = vsyncpa [#allocation4], 1 }

</bundles_post_ra>
